<compile_context>
chip_gen: v7x
topology: tpu7x:2x2x1
jax: 0.10.0
libtpu: 0.0.40
codegen_flags: <defaults>
</compile_context>

<pallas_src>
import functools

import jax
import jax.numpy as jnp
from jax.experimental import pallas as pl
from jax.experimental.pallas import tpu as pltpu

LANE = 128       # lane width (last dim of a vreg)
SUBLANE = 8      # f32 sublane count

_VMEM = pl.BlockSpec(memory_space=pltpu.MemorySpace.VMEM)


def _round_up(n, m):
    return ((n + m - 1) // m) * m


def _pad_axis(x, target, axis):
    pad = target - x.shape[axis]
    if pad <= 0:
        return x
    widths = [(0, 0)] * x.ndim
    widths[axis] = (0, pad)
    return jnp.pad(x, widths)


# --------------------------------------------------------------------------
# Fused Pallas kernel: all GIN layers + mean readout + final fc
# --------------------------------------------------------------------------
def gin_fused_kernel(a_ref, m_ref, x_ref, w_ref, b_ref, wfc_ref, bfc_ref,
                     o_ref, *, num_layers):
    """relu-chained GIN layers, per-graph mean readout, final linear.

    a_ref  : [Np, Np]  bf16   A_hat = A + I (zero-padded)
    m_ref  : [Gp, Np]  f32    per-graph mean-readout matrix (zero-padded)
    x_ref  : [Np, Fp]  bf16   input node features (zero-padded)
    w_ref  : [L, Fp, Fp] bf16 stacked layer weights (zero-padded)
    b_ref  : [L, 1, Fp]  f32  stacked layer biases (zero-padded)
    wfc_ref: [Fp, Fp]  f32    final fc weight (zero-padded)
    bfc_ref: [1, Fp]   f32    final fc bias (zero-padded)
    o_ref  : [Gp, Fp]  f32    output logits (padded; real block is [G, C])
    """
    a = a_ref[...]            # bf16, stays in vregs/VMEM for all layers
    h = x_ref[...]            # bf16

    # Layers unrolled statically; h never leaves VMEM between layers.
    for l in range(num_layers):
        # GIN sum aggregation with eps=0: (A + I) @ h  ==  h + sum_neighbors h
        agg = jnp.dot(a, h, preferred_element_type=jnp.float32)          # f32
        z = jnp.dot(agg.astype(jnp.bfloat16), w_ref[l],
                    preferred_element_type=jnp.float32) + b_ref[l]
        h = jnp.maximum(z, 0.0).astype(jnp.bfloat16)

    # Per-graph mean readout (M already carries the 1/|V_g| factors) + fc.
    hg = jnp.dot(m_ref[...], h.astype(jnp.float32),
                 preferred_element_type=jnp.float32)                      # [Gp, Fp]
    out = jnp.dot(hg, wfc_ref[...],
                  preferred_element_type=jnp.float32) + bfc_ref[...]
    o_ref[...] = out.astype(o_ref.dtype)


# --------------------------------------------------------------------------
# Full forward (padding + fused pallas_call), jitted end-to-end
# --------------------------------------------------------------------------
@jax.jit
def gin_forward(adj, mean_mat, in_feat, params):
    n = adj.shape[0]
    g = mean_mat.shape[0]
    num_layers = len(params["layers"])
    in_feats = params["layers"][0][0].shape[0]
    hidden = params["layers"][0][0].shape[1]
    num_classes = params["fc"][1].shape[0]

    n_pad = _round_up(n, LANE)                              # node axis -> MXU/lane friendly
    g_pad = _round_up(g, SUBLANE)                           # graph axis -> full sublane store
    f_pad = _round_up(max(in_feats, hidden, num_classes), LANE)

    # Fold the GIN self term (eps=0) into the adjacency: A_hat = A + I.
    a_hat = adj + jnp.eye(n, dtype=adj.dtype)
    a_hat = _pad_axis(_pad_axis(a_hat, n_pad, 0), n_pad, 1).astype(jnp.bfloat16)

    m = _pad_axis(_pad_axis(mean_mat, g_pad, 0), n_pad, 1).astype(jnp.float32)
    x = _pad_axis(_pad_axis(in_feat, n_pad, 0), f_pad, 1).astype(jnp.bfloat16)

    # Zero-pad weights/biases to [Fp, Fp]/[Fp]; padded lanes stay exactly zero
    # through bias + relu, so no garbage propagates into the mean readout.
    ws, bs = [], []
    for w, b in params["layers"]:
        ws.append(_pad_axis(_pad_axis(w, f_pad, 0), f_pad, 1))
        bs.append(_pad_axis(b, f_pad, 0))
    w_stack = jnp.stack(ws).astype(jnp.bfloat16)            # [L, Fp, Fp]
    b_stack = jnp.stack(bs)[:, None, :].astype(jnp.float32) # [L, 1, Fp]

    w_fc, b_fc = params["fc"]
    w_fc_p = _pad_axis(_pad_axis(w_fc, f_pad, 0), f_pad, 1).astype(jnp.float32)
    b_fc_p = _pad_axis(b_fc, f_pad, 0)[None, :].astype(jnp.float32)

    flops = (num_layers * (2 * n_pad * n_pad * f_pad + 2 * n_pad * f_pad * f_pad)
             + 2 * g_pad * n_pad * f_pad + 2 * g_pad * f_pad * f_pad)
    bytes_accessed = (a_hat.size * 2 + x.size * 2 + m.size * 4
                      + w_stack.size * 2 + b_stack.size * 4
                      + w_fc_p.size * 4 + b_fc_p.size * 4 + g_pad * f_pad * 4)

    kernel = functools.partial(gin_fused_kernel, num_layers=num_layers)
    out_padded = pl.pallas_call(
        kernel,
        out_shape=jax.ShapeDtypeStruct((g_pad, f_pad), jnp.float32),
        in_specs=[_VMEM] * 7,
        out_specs=_VMEM,
        cost_estimate=pl.CostEstimate(flops=flops, transcendentals=0,
                                      bytes_accessed=bytes_accessed),
    )(a_hat, m, x, w_stack, b_stack, w_fc_p, b_fc_p)

    return out_padded[:g, :num_classes]


# --------------------------------------------------------------------------
# Parameter init (deterministic, matches nn.Linear shapes; stored as (in, out))
# --------------------------------------------------------------------------
def init_linear(key, fan_in, fan_out):
    kw, kb = jax.random.split(key)
    bound = 1.0 / jnp.sqrt(jnp.float32(fan_in))
    w = jax.random.uniform(kw, (fan_in, fan_out), jnp.float32, -bound, bound)
    b = jax.random.uniform(kb, (fan_out,), jnp.float32, -bound, bound)
    return w, b


def init_gin_params(key, in_feats, hidden_size, num_classes, num_layers=3):
    keys = jax.random.split(key, num_layers + 1)
    layers = [init_linear(keys[0], in_feats, hidden_size)]
    for i in range(1, num_layers):
        layers.append(init_linear(keys[i], hidden_size, hidden_size))
    fc = init_linear(keys[num_layers], hidden_size, num_classes)
    return {"layers": layers, "fc": fc}


# --------------------------------------------------------------------------
# Pure-JAX reference (f32) for a sanity check of the fused kernel
# --------------------------------------------------------------------------
def gin_reference(adj, mean_mat, in_feat, params):
    a_hat = adj + jnp.eye(adj.shape[0], dtype=adj.dtype)
    h = in_feat
    for w, b in params["layers"]:
        h = jnp.maximum(a_hat @ h @ w + b, 0.0)
    hg = mean_mat @ h
    w_fc, b_fc = params["fc"]
    return hg @ w_fc + b_fc


# --------------------------------------------------------------------------
# Demo
# --------------------------------------------------------------------------
if __name__ == "__main__":
    N_NODES = 32          # 2 graphs x 16 nodes each
    N_GRAPHS = 2
    IN_FEATS = 16
    HIDDEN = 32
    NUM_CLASSES = 8
    NUM_LAYERS = 3

    key = jax.random.PRNGKey(0)
    k_feat, k_adj, k_param = jax.random.split(key, 3)

    # node features
    in_feat = jax.random.normal(k_feat, (N_NODES, IN_FEATS), jnp.float32)

    # block-diagonal adjacency (two graphs of 16 nodes, symmetric, no self loops)
    per_graph = N_NODES // N_GRAPHS
    raw = jax.random.bernoulli(k_adj, 0.3, (N_NODES, N_NODES)).astype(jnp.float32)
    sym = jnp.maximum(raw, raw.T)
    block_mask = jnp.zeros((N_NODES, N_NODES), jnp.float32)
    for gi in range(N_GRAPHS):
        s = gi * per_graph
        block_mask = block_mask.at[s:s + per_graph, s:s + per_graph].set(1.0)
    adj = sym * block_mask * (1.0 - jnp.eye(N_NODES, dtype=jnp.float32))

    # per-graph mean-readout matrix [G, N]
    mean_mat = jnp.zeros((N_GRAPHS, N_NODES), jnp.float32)
    for gi in range(N_GRAPHS):
        s = gi * per_graph
        mean_mat = mean_mat.at[gi, s:s + per_graph].set(1.0 / per_graph)

    params = init_gin_params(k_param, IN_FEATS, HIDDEN, NUM_CLASSES, NUM_LAYERS)

    out = gin_forward(adj, mean_mat, in_feat, params)
    out = jax.block_until_ready(out)

    ref = gin_reference(adj, mean_mat, in_feat, params)

    assert out.shape == (N_GRAPHS, NUM_CLASSES)
    assert jnp.all(jnp.isfinite(out))
    # bf16 operands inside the kernel -> loose tolerance vs f32 reference
    assert jnp.allclose(out, ref, rtol=0.1, atol=0.1), (
        f"max abs err {jnp.max(jnp.abs(out - ref)):.4f}")
    print("KERNEL_OK")
</pallas_src>

<mosaic_0001>
module attributes {stable_mosaic.version = 11 : i64} {
  func.func @gin_fused_kernel(%arg0: memref<128x128xbf16, #tpu.memory_space<vmem>>, %arg1: memref<8x128xf32, #tpu.memory_space<vmem>>, %arg2: memref<128x128xbf16, #tpu.memory_space<vmem>>, %arg3: memref<3x128x128xbf16, #tpu.memory_space<vmem>>, %arg4: memref<3x1x128xf32, #tpu.memory_space<vmem>>, %arg5: memref<128x128xf32, #tpu.memory_space<vmem>>, %arg6: memref<1x128xf32, #tpu.memory_space<vmem>>, %arg7: memref<8x128xf32, #tpu.memory_space<vmem>>) attributes {dimension_semantics = [], scalar_prefetch = 0 : i64, scratch_operands = 0 : i64, tpu.core_type = #tpu.core_type<tc>} {
    %c0 = arith.constant 0 : index
    %c0_0 = arith.constant 0 : index
    %0 = vector.load %arg0[%c0, %c0_0] : memref<128x128xbf16, #tpu.memory_space<vmem>>, vector<128x128xbf16>
    %c0_1 = arith.constant 0 : index
    %c0_2 = arith.constant 0 : index
    %1 = vector.load %arg2[%c0_1, %c0_2] : memref<128x128xbf16, #tpu.memory_space<vmem>>, vector<128x128xbf16>
    %cst = arith.constant dense<0.000000e+00> : vector<128x128xf32>
    %2 = tpu.matmul %0, %1, %cst {dimension_numbers = #tpu.dot_dimension_numbers<[1], [0], [0], [1], [0, 0, 1, 1], [], []>} : vector<128x128xbf16>, vector<128x128xbf16>, vector<128x128xf32> -> vector<128x128xf32>
    %3 = arith.truncf %2 : vector<128x128xf32> to vector<128x128xbf16>
    %c0_3 = arith.constant 0 : index
    %c0_4 = arith.constant 0 : index
    %c0_5 = arith.constant 0 : index
    %4 = vector.load %arg3[%c0_3, %c0_4, %c0_5] : memref<3x128x128xbf16, #tpu.memory_space<vmem>>, vector<1x128x128xbf16>
    %5 = vector.shape_cast %4 : vector<1x128x128xbf16> to vector<128x128xbf16>
    %cst_6 = arith.constant dense<0.000000e+00> : vector<128x128xf32>
    %6 = tpu.matmul %3, %5, %cst_6 {dimension_numbers = #tpu.dot_dimension_numbers<[1], [0], [0], [1], [0, 0, 1, 1], [], []>} : vector<128x128xbf16>, vector<128x128xbf16>, vector<128x128xf32> -> vector<128x128xf32>
    %c0_7 = arith.constant 0 : index
    %c0_8 = arith.constant 0 : index
    %c0_9 = arith.constant 0 : index
    %7 = vector.load %arg4[%c0_7, %c0_8, %c0_9] : memref<3x1x128xf32, #tpu.memory_space<vmem>>, vector<1x1x128xf32>
    %8 = vector.shape_cast %7 : vector<1x1x128xf32> to vector<1x128xf32>
    %9 = vector.broadcast %8 : vector<1x128xf32> to vector<128x128xf32>
    %10 = arith.addf %6, %9 : vector<128x128xf32>
    %cst_10 = arith.constant 0.000000e+00 : f32
    %11 = vector.broadcast %cst_10 : f32 to vector<128x128xf32>
    %12 = arith.maximumf %10, %11 : vector<128x128xf32>
    %13 = arith.truncf %12 : vector<128x128xf32> to vector<128x128xbf16>
    %cst_11 = arith.constant dense<0.000000e+00> : vector<128x128xf32>
    %14 = tpu.matmul %0, %13, %cst_11 {dimension_numbers = #tpu.dot_dimension_numbers<[1], [0], [0], [1], [0, 0, 1, 1], [], []>} : vector<128x128xbf16>, vector<128x128xbf16>, vector<128x128xf32> -> vector<128x128xf32>
    %15 = arith.truncf %14 : vector<128x128xf32> to vector<128x128xbf16>
    %c1 = arith.constant 1 : index
    %c0_12 = arith.constant 0 : index
    %c0_13 = arith.constant 0 : index
    %16 = vector.load %arg3[%c1, %c0_12, %c0_13] : memref<3x128x128xbf16, #tpu.memory_space<vmem>>, vector<1x128x128xbf16>
    %17 = vector.shape_cast %16 : vector<1x128x128xbf16> to vector<128x128xbf16>
    %cst_14 = arith.constant dense<0.000000e+00> : vector<128x128xf32>
    %18 = tpu.matmul %15, %17, %cst_14 {dimension_numbers = #tpu.dot_dimension_numbers<[1], [0], [0], [1], [0, 0, 1, 1], [], []>} : vector<128x128xbf16>, vector<128x128xbf16>, vector<128x128xf32> -> vector<128x128xf32>
    %c1_15 = arith.constant 1 : index
    %c0_16 = arith.constant 0 : index
    %c0_17 = arith.constant 0 : index
    %19 = vector.load %arg4[%c1_15, %c0_16, %c0_17] : memref<3x1x128xf32, #tpu.memory_space<vmem>>, vector<1x1x128xf32>
    %20 = vector.shape_cast %19 : vector<1x1x128xf32> to vector<1x128xf32>
    %21 = vector.broadcast %20 : vector<1x128xf32> to vector<128x128xf32>
    %22 = arith.addf %18, %21 : vector<128x128xf32>
    %cst_18 = arith.constant 0.000000e+00 : f32
    %23 = vector.broadcast %cst_18 : f32 to vector<128x128xf32>
    %24 = arith.maximumf %22, %23 : vector<128x128xf32>
    %25 = arith.truncf %24 : vector<128x128xf32> to vector<128x128xbf16>
    %cst_19 = arith.constant dense<0.000000e+00> : vector<128x128xf32>
    %26 = tpu.matmul %0, %25, %cst_19 {dimension_numbers = #tpu.dot_dimension_numbers<[1], [0], [0], [1], [0, 0, 1, 1], [], []>} : vector<128x128xbf16>, vector<128x128xbf16>, vector<128x128xf32> -> vector<128x128xf32>
    %27 = arith.truncf %26 : vector<128x128xf32> to vector<128x128xbf16>
    %c2 = arith.constant 2 : index
    %c0_20 = arith.constant 0 : index
    %c0_21 = arith.constant 0 : index
    %28 = vector.load %arg3[%c2, %c0_20, %c0_21] : memref<3x128x128xbf16, #tpu.memory_space<vmem>>, vector<1x128x128xbf16>
    %29 = vector.shape_cast %28 : vector<1x128x128xbf16> to vector<128x128xbf16>
    %cst_22 = arith.constant dense<0.000000e+00> : vector<128x128xf32>
    %30 = tpu.matmul %27, %29, %cst_22 {dimension_numbers = #tpu.dot_dimension_numbers<[1], [0], [0], [1], [0, 0, 1, 1], [], []>} : vector<128x128xbf16>, vector<128x128xbf16>, vector<128x128xf32> -> vector<128x128xf32>
    %c2_23 = arith.constant 2 : index
    %c0_24 = arith.constant 0 : index
    %c0_25 = arith.constant 0 : index
    %31 = vector.load %arg4[%c2_23, %c0_24, %c0_25] : memref<3x1x128xf32, #tpu.memory_space<vmem>>, vector<1x1x128xf32>
    %32 = vector.shape_cast %31 : vector<1x1x128xf32> to vector<1x128xf32>
    %33 = vector.broadcast %32 : vector<1x128xf32> to vector<128x128xf32>
    %34 = arith.addf %30, %33 : vector<128x128xf32>
    %cst_26 = arith.constant 0.000000e+00 : f32
    %35 = vector.broadcast %cst_26 : f32 to vector<128x128xf32>
    %36 = arith.maximumf %34, %35 : vector<128x128xf32>
    %37 = arith.truncf %36 : vector<128x128xf32> to vector<128x128xbf16>
    %c0_27 = arith.constant 0 : index
    %c0_28 = arith.constant 0 : index
    %38 = vector.load %arg1[%c0_27, %c0_28] : memref<8x128xf32, #tpu.memory_space<vmem>>, vector<8x128xf32>
    %39 = arith.extf %37 : vector<128x128xbf16> to vector<128x128xf32>
    %cst_29 = arith.constant dense<0.000000e+00> : vector<8x128xf32>
    %40 = tpu.matmul %38, %39, %cst_29 {dimension_numbers = #tpu.dot_dimension_numbers<[1], [0], [0], [1], [0, 0, 1, 1], [], []>} : vector<8x128xf32>, vector<128x128xf32>, vector<8x128xf32> -> vector<8x128xf32>
    %c0_30 = arith.constant 0 : index
    %c0_31 = arith.constant 0 : index
    %41 = vector.load %arg5[%c0_30, %c0_31] : memref<128x128xf32, #tpu.memory_space<vmem>>, vector<128x128xf32>
    %cst_32 = arith.constant dense<0.000000e+00> : vector<8x128xf32>
    %42 = tpu.matmul %40, %41, %cst_32 {dimension_numbers = #tpu.dot_dimension_numbers<[1], [0], [0], [1], [0, 0, 1, 1], [], []>} : vector<8x128xf32>, vector<128x128xf32>, vector<8x128xf32> -> vector<8x128xf32>
    %c0_33 = arith.constant 0 : index
    %c0_34 = arith.constant 0 : index
    %43 = vector.load %arg6[%c0_33, %c0_34] : memref<1x128xf32, #tpu.memory_space<vmem>>, vector<1x128xf32>
    %44 = vector.broadcast %43 : vector<1x128xf32> to vector<8x128xf32>
    %45 = arith.addf %42, %44 : vector<8x128xf32>
    %c0_35 = arith.constant 0 : index
    %c0_36 = arith.constant 0 : index
    %46 = vector.load %arg7[%c0_35, %c0_36] : memref<8x128xf32, #tpu.memory_space<vmem>>, vector<8x128xf32>
    tpu.vector_store %arg7[%c0_35, %c0_36], %45 {strides = array<i32>} : memref<8x128xf32, #tpu.memory_space<vmem>>, vector<8x128xf32>,
    return
  }
}

</mosaic_0001>

<bundles_post_ra>
// kernel: gin_forward.1
= control target key start
LH: loop header
LB: loop body
LE: loop exit
PB: predicated region body
PF: predicated region fallthrough
CT: control target
= control target key end

     0   :  { %vm1797_vm0 = vmmov 0   ;;  %s2081_s2 = inlined_call_operand.vmem [shape: bf16[128,128], index: 2, kind: input, shape index: {}]   ;;  %s2082_s0 = inlined_call_operand.vmem [shape: bf16[128,128], index: 0, kind: input, shape index: {}]   ;;  %s2083_s3 = inlined_call_operand.vmem [shape: bf16[3,128,128], index: 3, kind: input, shape index: {}]   ;;  %s2084_s4 = inlined_call_operand.vmem [shape: f32[3,1,128], index: 4, kind: input, shape index: {}]   ;;  %s2085_s5 = inlined_call_operand.vmem [shape: f32[128,128], index: 5, kind: input, shape index: {}]   ;;  %s2086_s1 = inlined_call_operand.vmem [shape: f32[8,128], index: 1, kind: input, shape index: {}]   ;;  %s2087_s6 = inlined_call_operand.vmem [shape: f32[1,128], index: 6, kind: input, shape index: {}]   ;;  %s2088_s7 = inlined_call_operand.vmem [shape: f32[8,128], index: 7, kind: output, shape index: {}]  }
   0x1   :  { %v1756_v0 = vld [vmem:[%s2081_s2] sm:$0xff]   ;;  %v1757_v1 = vld [vmem:[%s2081_s2 + $0x8] sm:$0xff]   ;;  %v1758_v2 = vld [vmem:[%s2081_s2 + $0x10] sm:$0xff]  }
   0x2   :  { %1443 = vmatprep.subr.bf16.mxu0 %v1756_v0  ;;  %v1759_v3 = vld [vmem:[%s2081_s2 + $0x18] sm:$0xff]   ;;  %v1854_v4 = vld [vmem:[%s2082_s0] sm:$0xff]   ;;  %v1761_v6 = vld [vmem:[%s2081_s2 + $0x28] sm:$0xff]  }
   0x3   :  { %1444 = vmatpush3.bf16.msra.mxu0 %v1756_v0  ;;  %1459 = vmatprep.mubr.bf16.mxu0 %v1854_v4  ;;  %v1760_v5 = vld [vmem:[%s2081_s2 + $0x20] sm:$0xff]   ;;  %v1773_v8 = vld [vmem:[%s2083_s3 + $0x8] sm:$0xff]   ;;  %v1762_v9 = vld [vmem:[%s2081_s2 + $0x30] sm:$0xff]  }
   0x4   :  { %1445 = vmatprep.subr.bf16.mxu0 %v1757_v1  ;;  %v1772_v7 = vld [vmem:[%s2083_s3] sm:$0xff]   ;;  %v1774_v10 = vld [vmem:[%s2083_s3 + $0x10] sm:$0xff]   ;;  %v1763_v11 = vld [vmem:[%s2081_s2 + $0x38] sm:$0xff]  }
   0x5   :  { %1475 = vmatprep.subr.bf16.mxu1 %v1772_v7  ;;  %v1775_v12 = vld [vmem:[%s2083_s3 + $0x18] sm:$0xff]   ;;  %v1776_v13 = vld [vmem:[%s2083_s3 + $0x20] sm:$0xff]   ;;  %v1887_v14 = vld [vmem:[%s2082_s0 + $0x8] sm:$0xff]  }
   0x6   :  { %1476 = vmatpush3.bf16.msra.mxu1 %v1772_v7  ;;  %v1892_v15 = vld [vmem:[%s2082_s0 + $0x10] sm:$0xff]   ;;  %v1777_v16 = vld [vmem:[%s2083_s3 + $0x28] sm:$0xff]   ;;  %v1905_v18 = vld [vmem:[%s2082_s0 + $0x18] sm:$0xff]  }
   0x7   :  { %1446 = vmatpush3.bf16.msra.mxu0 %v1757_v1  ;;  %1477 = vmatprep.subr.bf16.mxu1 %v1773_v8  ;;  %v1778_v17 = vld [vmem:[%s2083_s3 + $0x30] sm:$0xff]   ;;  %v1910_v19 = vld [vmem:[%s2082_s0 + $0x20] sm:$0xff]   ;;  %v1917_v20 = vld [vmem:[%s2082_s0 + $0x28] sm:$0xff]  }
   0x8   :  { %1447 = vmatprep.subr.bf16.mxu0 %v1758_v2  ;;  %v1922_v21 = vld [vmem:[%s2082_s0 + $0x30] sm:$0xff]   ;;  %v1929_v22 = vld [vmem:[%s2082_s0 + $0x38] sm:$0xff]   ;;  %v1780_v48 = vld [vmem:[%s2083_s3 + $0x40] sm:$0xff]  }
   0x9   :  { %v1779_v23 = vld [vmem:[%s2083_s3 + $0x38] sm:$0xff]   ;;  %v1781_v49 = vld [vmem:[%s2083_s3 + $0x48] sm:$0xff]   ;;  %v1782_v50 = vld [vmem:[%s2083_s3 + $0x50] sm:$0xff]  }
   0xa   :  { %1478 = vmatpush3.bf16.msra.mxu1 %v1773_v8  ;;  %v1783_v51 = vld [vmem:[%s2083_s3 + $0x58] sm:$0xff]   ;;  %v1784_v52 = vld [vmem:[%s2083_s3 + $0x60] sm:$0xff]   ;;  %v1785_v53 = vld [vmem:[%s2083_s3 + $0x68] sm:$0xff]  }
   0xb   :  { %1448 = vmatpush3.bf16.msra.mxu0 %v1758_v2  ;;  %1479 = vmatprep.subr.bf16.mxu1 %v1774_v10  ;;  %v1786_v54 = vld [vmem:[%s2083_s3 + $0x70] sm:$0xff]   ;;  %v1251_v55 = vld [vmem:[%s2084_s4] ss:$0 sm:$0xff] }
   0xc   :  { %1449 = vmatprep.subr.bf16.mxu0 %v1759_v3 }
   0xe   :  { %1480 = vmatpush3.bf16.msra.mxu1 %v1774_v10 }
   0xf   :  { %1450 = vmatpush3.bf16.msra.mxu0 %v1759_v3  ;;  %1481 = vmatprep.subr.bf16.mxu1 %v1775_v12 }
  0x10   :  { %1451 = vmatprep.subr.bf16.mxu0 %v1760_v5 }
  0x12   :  { %1482 = vmatpush3.bf16.msra.mxu1 %v1775_v12 }
  0x13   :  { %1452 = vmatpush3.bf16.msra.mxu0 %v1760_v5  ;;  %1483 = vmatprep.subr.bf16.mxu1 %v1776_v13 }
  0x14   :  { %1453 = vmatprep.subr.bf16.mxu0 %v1761_v6 }
  0x16   :  { %1484 = vmatpush3.bf16.msra.mxu1 %v1776_v13 }
  0x17   :  { %1454 = vmatpush3.bf16.msra.mxu0 %v1761_v6  ;;  %1485 = vmatprep.subr.bf16.mxu1 %v1777_v16 }
  0x18   :  { %1455 = vmatprep.subr.bf16.mxu0 %v1762_v9 }
  0x1a   :  { %1486 = vmatpush3.bf16.msra.mxu1 %v1777_v16 }
  0x1b   :  { %1456 = vmatpush3.bf16.msra.mxu0 %v1762_v9  ;;  %1487 = vmatprep.subr.bf16.mxu1 %v1778_v17 }
  0x1c   :  { %1457 = vmatprep.subr.bf16.mxu0 %v1763_v11 }
  0x1e   :  { %1488 = vmatpush3.bf16.msra.mxu1 %v1778_v17 }
  0x1f   :  { %1458 = vmatpush3.bf16.msra.mxu0 %v1763_v11  ;;  %1489 = vmatprep.subr.bf16.mxu1 %v1779_v23 }
  0x22   :  { %1460 = vmatmul.mubr.bf16.vlgmr.msra.gmra.mrb[0].mxu0 %v1887_v14  ;;  %1490 = vmatpush3.bf16.msra.mxu1 %v1779_v23 }
  0x23   :  { %1463 = vmatprep.mubr.bf16.mxu0 %v1892_v15  ;;  %1539 = vmatprep.subr.bf16.mxu1 %v1780_v48 }
  0x2a   :  { %1464 = vmatmul.mubr.bf16.gmra.mrb[4].mxu0 %v1905_v18 }
  0x2b   :  { %1467 = vmatprep.mubr.bf16.mxu0 %v1910_v19 }
  0x32   :  { %1468 = vmatmul.mubr.bf16.gmra.mrb[8].mxu0 %v1917_v20 }
  0x33   :  { %1471 = vmatprep.mubr.bf16.mxu0 %v1922_v21 }
  0x3a   :  { %1472 = vmatmul.mubr.bf16.gmra.mrb[12].mxu0 %v1929_v22 }
  0x3b   :  { %1523 = vmatprep.mubr.bf16.mxu0 %v1854_v4 }
  0xf5   :  { %v1461_v24 = vpop.f32.mrb[0].mxu0 }
  0xf6   :  { %v189_v25 = vpop.f32.mrb[1].mxu0 }
  0xf7   :  { %v1462_v26 = vpop.f32.mrb[2].mxu0 }
  0xf8   :  { %v253_v27 = vpack.c.bf16 %v1462_v26, %v1461_v24  ;;  %v192_v28 = vpop.f32.mrb[3].mxu0 }
  0xf9   :  { %v252_v29 = vpack.c.bf16 %v192_v28, %v189_v25 }
  0xfb   :  { %1491 = vmatprep.mubr.bf16.mxu1 %v252_v29 }
  0xfc   :  { %1492 = vmatmul.mubr.bf16.vlgmr.msra.gmra.mrb[0].mxu1 %v253_v27 }
  0xfd   :  { %v1465_v30 = vpop.f32.mrb[4].mxu0  ;;  %1540 = vmatpush3.bf16.msra.mxu1 %v1780_v48 }
  0xfe   :  { %v205_v31 = vpop.f32.mrb[5].mxu0  ;;  %1541 = vmatprep.subr.bf16.mxu1 %v1781_v49 }
  0xff   :  { %v1466_v32 = vpop.f32.mrb[6].mxu0 }
 0x100   :  { %v255_v33 = vpack.c.bf16 %v1466_v32, %v1465_v30  ;;  %v208_v34 = vpop.f32.mrb[7].mxu0 }
 0x101   :  { %v254_v35 = vpack.c.bf16 %v208_v34, %v205_v31  ;;  %1542 = vmatpush3.bf16.msra.mxu1 %v1781_v49 }
 0x102   :  { %1543 = vmatprep.subr.bf16.mxu1 %v1782_v50 }
 0x103   :  { %1495 = vmatprep.mubr.bf16.mxu1 %v254_v35 }
 0x104   :  { %1496 = vmatmul.mubr.bf16.gmra.mrb[4].mxu1 %v255_v33 }
 0x105   :  { %v1469_v36 = vpop.f32.mrb[8].mxu0  ;;  %1544 = vmatpush3.bf16.msra.mxu1 %v1782_v50 }
 0x106   :  { %v221_v37 = vpop.f32.mrb[9].mxu0  ;;  %1545 = vmatprep.subr.bf16.mxu1 %v1783_v51 }
 0x107   :  { %v1470_v38 = vpop.f32.mrb[10].mxu0 }
 0x108   :  { %v257_v39 = vpack.c.bf16 %v1470_v38, %v1469_v36  ;;  %v224_v40 = vpop.f32.mrb[11].mxu0 }
 0x109   :  { %v256_v41 = vpack.c.bf16 %v224_v40, %v221_v37  ;;  %1546 = vmatpush3.bf16.msra.mxu1 %v1783_v51 }
 0x10a   :  { %1547 = vmatprep.subr.bf16.mxu1 %v1784_v52 }
 0x10b   :  { %1499 = vmatprep.mubr.bf16.mxu1 %v256_v41 }
 0x10c   :  { %1500 = vmatmul.mubr.bf16.gmra.mrb[8].mxu1 %v257_v39 }
 0x10d   :  { %v1473_v42 = vpop.f32.mrb[12].mxu0  ;;  %1548 = vmatpush3.bf16.msra.mxu1 %v1784_v52 }
 0x10e   :  { %v237_v43 = vpop.f32.mrb[13].mxu0  ;;  %1549 = vmatprep.subr.bf16.mxu1 %v1785_v53 }
 0x10f   :  { %v1474_v44 = vpop.f32.mrb[14].mxu0 }
 0x110   :  { %v259_v45 = vpack.c.bf16 %v1474_v44, %v1473_v42  ;;  %v240_v46 = vpop.f32.mrb[15].mxu0 }
 0x111   :  { %v258_v47 = vpack.c.bf16 %v240_v46, %v237_v43  ;;  %1550 = vmatpush3.bf16.msra.mxu1 %v1785_v53 }
 0x112   :  { %1551 = vmatprep.subr.bf16.mxu1 %v1786_v54 }
 0x113   :  { %1503 = vmatprep.mubr.bf16.mxu1 %v258_v47 }
 0x114   :  { %1504 = vmatmul.mubr.bf16.gmra.mrb[12].mxu1 %v259_v45 }
 0x115   :  { %1552 = vmatpush3.bf16.msra.mxu1 %v1786_v54 }
 0x1cf   :  { %v1493_v56 = vpop.f32.mrb[0].mxu1 }
 0x1d0   :  { %v374_v57 = vadd.f32 %v1493_v56, %v1251_v55  ;;  %v365_v58 = vpop.f32.mrb[1].mxu1 }
 0x1d1   :  { %v366_v59 = vadd.f32 %v1251_v55, %v365_v58  ;;  %v1494_v60 = vpop.f32.mrb[2].mxu1 }
 0x1d2   :  { %v377_v61 = vadd.f32 %v1494_v60, %v1251_v55  ;;  %v368_v62 = vpop.f32.mrb[3].mxu1  ;;  %v430_v0 = vmax.f32 %v374_v57, 0.0 }
 0x1d3   :  { %v369_v63 = vadd.f32 %v1251_v55, %v368_v62  ;;  %v428_v2 = vmax.f32 %v366_v59, 0.0 }
 0x1d4   :  { %v431_v1 = vmax.f32 %v377_v61, 0.0 }
 0x1d5   :  { %v429_v3 = vmax.f32 %v369_v63, 0.0 }
 0x1d6   :  { %v445_v5 = vpack.c.bf16 %v431_v1, %v430_v0 }
 0x1d7   :  { %v444_v6 = vpack.c.bf16 %v429_v3, %v428_v2  ;;  %v1497_v7 = vpop.f32.mrb[4].mxu1 }
 0x1d8   :  { %v390_v8 = vadd.f32 %v1497_v7, %v1251_v55  ;;  %v381_v9 = vpop.f32.mrb[5].mxu1 }
 0x1d9   :  { %v382_v10 = vadd.f32 %v1251_v55, %v381_v9  ;;  %v1498_v11 = vpop.f32.mrb[6].mxu1  ;;  %1507 = vmatprep.subr.bf16.mxu0 %v444_v6 }
 0x1da   :  { %v393_v12 = vadd.f32 %v1498_v11, %v1251_v55  ;;  %v384_v13 = vpop.f32.mrb[7].mxu1  ;;  %1508 = vmatpush3.bf16.msra.mxu0 %v444_v6  ;;  %v434_v17 = vmax.f32 %v390_v8, 0.0 }
 0x1db   :  { %v385_v16 = vadd.f32 %v1251_v55, %v384_v13  ;;  %1509 = vmatprep.subr.bf16.mxu0 %v445_v5  ;;  %v432_v24 = vmax.f32 %v382_v10, 0.0 }
 0x1dc   :  { %v435_v23 = vmax.f32 %v393_v12, 0.0 }
 0x1dd   :  { %v433_v25 = vmax.f32 %v385_v16, 0.0 }
 0x1de   :  { %v447_v26 = vpack.c.bf16 %v435_v23, %v434_v17  ;;  %1510 = vmatpush3.bf16.msra.mxu0 %v445_v5 }
 0x1df   :  { %v446_v27 = vpack.c.bf16 %v433_v25, %v432_v24  ;;  %v1501_v28 = vpop.f32.mrb[8].mxu1  ;;  %v1788_v24 = vld [vmem:[%s2083_s3 + $0x80] sm:$0xff]   ;;  %v1789_v25 = vld [vmem:[%s2083_s3 + $0x88] sm:$0xff]  }
 0x1e0   :  { %v406_v29 = vadd.f32 %v1501_v28, %v1251_v55  ;;  %v397_v30 = vpop.f32.mrb[9].mxu1  ;;  %v1792_v28 = vld [vmem:[%s2083_s3 + $0xa0] sm:$0xff]  }
 0x1e1   :  { %v398_v31 = vadd.f32 %v1251_v55, %v397_v30  ;;  %v1502_v32 = vpop.f32.mrb[10].mxu1  ;;  %1511 = vmatprep.subr.bf16.mxu0 %v446_v27  ;;  %v1794_v30 = vld [vmem:[%s2083_s3 + $0xb0] sm:$0xff]  }
 0x1e2   :  { %v409_v33 = vadd.f32 %v1502_v32, %v1251_v55  ;;  %v400_v34 = vpop.f32.mrb[11].mxu1  ;;  %1512 = vmatpush3.bf16.msra.mxu0 %v446_v27  ;;  %v438_v36 = vmax.f32 %v406_v29, 0.0  ;;  %v1791_v27 = vld [vmem:[%s2083_s3 + $0x98] sm:$0xff]   ;;  %v1793_v29 = vld [vmem:[%s2083_s3 + $0xa8] sm:$0xff]  }
 0x1e3   :  { %v401_v35 = vadd.f32 %v1251_v55, %v400_v34  ;;  %1513 = vmatprep.subr.bf16.mxu0 %v447_v26  ;;  %v436_v38 = vmax.f32 %v398_v31, 0.0  ;;  %v1277_v31 = vld [vmem:[%s2084_s4 + $0x1] ss:$0 sm:$0xff] }
 0x1e4   :  { %v439_v37 = vmax.f32 %v409_v33, 0.0 }
 0x1e5   :  { %v437_v39 = vmax.f32 %v401_v35, 0.0 }
 0x1e6   :  { %v449_v40 = vpack.c.bf16 %v439_v37, %v438_v36  ;;  %1514 = vmatpush3.bf16.msra.mxu0 %v447_v26  ;;  %v1790_v26 = vld [vmem:[%s2083_s3 + $0x90] sm:$0xff]  }
 0x1e7   :  { %v448_v41 = vpack.c.bf16 %v437_v39, %v436_v38  ;;  %v1505_v42 = vpop.f32.mrb[12].mxu1 }
 0x1e8   :  { %v422_v43 = vadd.f32 %v1505_v42, %v1251_v55  ;;  %v413_v44 = vpop.f32.mrb[13].mxu1 }
 0x1e9   :  { %v414_v45 = vadd.f32 %v1251_v55, %v413_v44  ;;  %v1506_v46 = vpop.f32.mrb[14].mxu1  ;;  %1515 = vmatprep.subr.bf16.mxu0 %v448_v41 }
 0x1ea   :  { %v425_v47 = vadd.f32 %v1506_v46, %v1251_v55  ;;  %v416_v48 = vpop.f32.mrb[15].mxu1  ;;  %1516 = vmatpush3.bf16.msra.mxu0 %v448_v41  ;;  %v442_v50 = vmax.f32 %v422_v43, 0.0 }
 0x1eb   :  { %v417_v49 = vadd.f32 %v1251_v55, %v416_v48  ;;  %1517 = vmatprep.subr.bf16.mxu0 %v449_v40  ;;  %v440_v52 = vmax.f32 %v414_v45, 0.0  ;;  %v1787_v55 = vld [vmem:[%s2083_s3 + $0x78] sm:$0xff]  }
 0x1ec   :  { %v443_v51 = vmax.f32 %v425_v47, 0.0  ;;  %1553 = vmatprep.subr.bf16.mxu1 %v1787_v55 }
 0x1ed   :  { %v441_v53 = vmax.f32 %v417_v49, 0.0  ;;  %1554 = vmatpush3.bf16.msra.mxu1 %v1787_v55 }
 0x1ee   :  { %v451_v54 = vpack.c.bf16 %v443_v51, %v442_v50  ;;  %1518 = vmatpush3.bf16.msra.mxu0 %v449_v40  ;;  %1603 = vmatprep.subr.bf16.mxu1 %v1788_v24 }
 0x1ef   :  { %v450_v56 = vpack.c.bf16 %v441_v53, %v440_v52 }
 0x1f1   :  { %1519 = vmatprep.subr.bf16.mxu0 %v450_v56 }
 0x1f2   :  { %1520 = vmatpush3.bf16.msra.mxu0 %v450_v56 }
 0x1f3   :  { %1521 = vmatprep.subr.bf16.mxu0 %v451_v54 }
 0x1f6   :  { %1522 = vmatpush3.bf16.msra.mxu0 %v451_v54 }
 0x1f9   :  { %1524 = vmatmul.mubr.bf16.vlgmr.msra.gmra.mrb[16].mxu0 %v1887_v14 }
 0x1fa   :  { %1527 = vmatprep.mubr.bf16.mxu0 %v1892_v15 }
 0x201   :  { %1528 = vmatmul.mubr.bf16.gmra.mrb[20].mxu0 %v1905_v18 }
 0x202   :  { %1531 = vmatprep.mubr.bf16.mxu0 %v1910_v19 }
 0x209   :  { %1532 = vmatmul.mubr.bf16.gmra.mrb[24].mxu0 %v1917_v20 }
 0x20a   :  { %1535 = vmatprep.mubr.bf16.mxu0 %v1922_v21 }
 0x211   :  { %1536 = vmatmul.mubr.bf16.gmra.mrb[28].mxu0 %v1929_v22 }
 0x212   :  { %1587 = vmatprep.mubr.bf16.mxu0 %v1854_v4 }
 0x2cc   :  { %v1525_v57 = vpop.f32.mrb[16].mxu0 }
 0x2cd   :  { %v486_v58 = vpop.f32.mrb[17].mxu0 }
 0x2ce   :  { %v1526_v59 = vpop.f32.mrb[18].mxu0 }
 0x2cf   :  { %v550_v60 = vpack.c.bf16 %v1526_v59, %v1525_v57  ;;  %v489_v61 = vpop.f32.mrb[19].mxu0 }
 0x2d0   :  { %v549_v62 = vpack.c.bf16 %v489_v61, %v486_v58 }
 0x2d2   :  { %1555 = vmatprep.mubr.bf16.mxu1 %v549_v62 }
 0x2d3   :  { %1556 = vmatmul.mubr.bf16.vlgmr.msra.gmra.mrb[16].mxu1 %v550_v60 }
 0x2d4   :  { %v1529_v63 = vpop.f32.mrb[20].mxu0  ;;  %1604 = vmatpush3.bf16.msra.mxu1 %v1788_v24 }
 0x2d5   :  { %v502_v0 = vpop.f32.mrb[21].mxu0  ;;  %1605 = vmatprep.subr.bf16.mxu1 %v1789_v25 }
 0x2d6   :  { %v1530_v1 = vpop.f32.mrb[22].mxu0 }
 0x2d7   :  { %v552_v2 = vpack.c.bf16 %v1530_v1, %v1529_v63  ;;  %v505_v3 = vpop.f32.mrb[23].mxu0 }
 0x2d8   :  { %v551_v4 = vpack.c.bf16 %v505_v3, %v502_v0  ;;  %1606 = vmatpush3.bf16.msra.mxu1 %v1789_v25 }
 0x2d9   :  { %1607 = vmatprep.subr.bf16.mxu1 %v1790_v26 }
 0x2da   :  { %1559 = vmatprep.mubr.bf16.mxu1 %v551_v4 }
 0x2db   :  { %1560 = vmatmul.mubr.bf16.gmra.mrb[20].mxu1 %v552_v2 }
 0x2dc   :  { %v1533_v5 = vpop.f32.mrb[24].mxu0  ;;  %1608 = vmatpush3.bf16.msra.mxu1 %v1790_v26 }
 0x2dd   :  { %v518_v6 = vpop.f32.mrb[25].mxu0  ;;  %1609 = vmatprep.subr.bf16.mxu1 %v1791_v27 }
 0x2de   :  { %v1534_v7 = vpop.f32.mrb[26].mxu0 }
 0x2df   :  { %v554_v8 = vpack.c.bf16 %v1534_v7, %v1533_v5  ;;  %v521_v9 = vpop.f32.mrb[27].mxu0 }
 0x2e0   :  { %v553_v10 = vpack.c.bf16 %v521_v9, %v518_v6  ;;  %1610 = vmatpush3.bf16.msra.mxu1 %v1791_v27 }
 0x2e1   :  { %1611 = vmatprep.subr.bf16.mxu1 %v1792_v28 }
 0x2e2   :  { %1563 = vmatprep.mubr.bf16.mxu1 %v553_v10 }
 0x2e3   :  { %1564 = vmatmul.mubr.bf16.gmra.mrb[24].mxu1 %v554_v8 }
 0x2e4   :  { %v1537_v11 = vpop.f32.mrb[28].mxu0  ;;  %1612 = vmatpush3.bf16.msra.mxu1 %v1792_v28 }
 0x2e5   :  { %v534_v12 = vpop.f32.mrb[29].mxu0  ;;  %1613 = vmatprep.subr.bf16.mxu1 %v1793_v29 }
 0x2e6   :  { %v1538_v13 = vpop.f32.mrb[30].mxu0 }
 0x2e7   :  { %v556_v16 = vpack.c.bf16 %v1538_v13, %v1537_v11  ;;  %v537_v17 = vpop.f32.mrb[31].mxu0 }
 0x2e8   :  { %v555_v23 = vpack.c.bf16 %v537_v17, %v534_v12  ;;  %1614 = vmatpush3.bf16.msra.mxu1 %v1793_v29 }
 0x2e9   :  { %1615 = vmatprep.subr.bf16.mxu1 %v1794_v30 }
 0x2ea   :  { %1567 = vmatprep.mubr.bf16.mxu1 %v555_v23 }
 0x2eb   :  { %1568 = vmatmul.mubr.bf16.gmra.mrb[28].mxu1 %v556_v16 }
 0x2ec   :  { %1616 = vmatpush3.bf16.msra.mxu1 %v1794_v30 }
 0x3a6   :  { %v1557_v32 = vpop.f32.mrb[16].mxu1 }
 0x3a7   :  { %v673_v33 = vadd.f32 %v1557_v32, %v1277_v31  ;;  %v664_v34 = vpop.f32.mrb[17].mxu1 }
 0x3a8   :  { %v665_v35 = vadd.f32 %v1277_v31, %v664_v34  ;;  %v1558_v36 = vpop.f32.mrb[18].mxu1 }
 0x3a9   :  { %v676_v37 = vadd.f32 %v1558_v36, %v1277_v31  ;;  %v667_v38 = vpop.f32.mrb[19].mxu1  ;;  %v729_v40 = vmax.f32 %v673_v33, 0.0 }
 0x3aa   :  { %v668_v39 = vadd.f32 %v1277_v31, %v667_v38  ;;  %v727_v42 = vmax.f32 %v665_v35, 0.0 }
 0x3ab   :  { %v730_v41 = vmax.f32 %v676_v37, 0.0 }
 0x3ac   :  { %v728_v43 = vmax.f32 %v668_v39, 0.0 }
 0x3ad   :  { %v744_v44 = vpack.c.bf16 %v730_v41, %v729_v40 }
 0x3ae   :  { %v743_v45 = vpack.c.bf16 %v728_v43, %v727_v42  ;;  %v1561_v46 = vpop.f32.mrb[20].mxu1 }
 0x3af   :  { %v689_v47 = vadd.f32 %v1561_v46, %v1277_v31  ;;  %v680_v48 = vpop.f32.mrb[21].mxu1 }
 0x3b0   :  { %v681_v49 = vadd.f32 %v1277_v31, %v680_v48  ;;  %v1562_v50 = vpop.f32.mrb[22].mxu1  ;;  %1571 = vmatprep.subr.bf16.mxu0 %v743_v45 }
 0x3b1   :  { %v692_v51 = vadd.f32 %v1562_v50, %v1277_v31  ;;  %v683_v52 = vpop.f32.mrb[23].mxu1  ;;  %1572 = vmatpush3.bf16.msra.mxu0 %v743_v45  ;;  %v733_v54 = vmax.f32 %v689_v47, 0.0  ;;  %v1798_v50 = vmov 0.0  }
 0x3b2   :  { %v684_v53 = vadd.f32 %v1277_v31, %v683_v52  ;;  %1573 = vmatprep.subr.bf16.mxu0 %v744_v44  ;;  %v731_v55 = vmax.f32 %v681_v49, 0.0  ;;  %v1796_v49 = vmov 0.0|0.0   ;;  %v1138_v52 = vld [vmem:[%s2085_s5 + $0x8] sm:$0xff] }
 0x3b3   :  { %v734_v56 = vmax.f32 %v692_v51, 0.0  ;;  %v1137_v51 = vld [vmem:[%s2085_s5] sm:$0xff] }
 0x3b4   :  { %v732_v57 = vmax.f32 %v684_v53, 0.0  ;;  %v1139_v53 = vld [vmem:[%s2085_s5 + $0x10] sm:$0xff] }
 0x3b5   :  { %v746_v58 = vpack.c.bf16 %v734_v56, %v733_v54  ;;  %1574 = vmatpush3.bf16.msra.mxu0 %v744_v44  ;;  %v1730_v54 = vpack.c.bf16 %v1138_v52, %v1137_v51  ;;  %v1140_v56 = vld [vmem:[%s2085_s5 + $0x18] sm:$0xff] }
 0x3b6   :  { %v745_v59 = vpack.c.bf16 %v732_v57, %v731_v55  ;;  %v1565_v60 = vpop.f32.mrb[24].mxu1  ;;  %v1733_v55 = vpack.c.bf16 %v1140_v56, %v1139_v53  ;;  %v1141_v57 = vld [vmem:[%s2085_s5 + $0x20] sm:$0xff] }
 0x3b7   :  { %v705_v61 = vadd.f32 %v1565_v60, %v1277_v31  ;;  %v696_v62 = vpop.f32.mrb[25].mxu1  ;;  %v1143_v60 = vld [vmem:[%s2085_s5 + $0x30] sm:$0xff] }
 0x3b8   :  { %v697_v63 = vadd.f32 %v1277_v31, %v696_v62  ;;  %v1566_v0 = vpop.f32.mrb[26].mxu1  ;;  %1575 = vmatprep.subr.bf16.mxu0 %v745_v59 }
 0x3b9   :  { %v708_v1 = vadd.f32 %v1566_v0, %v1277_v31  ;;  %v699_v2 = vpop.f32.mrb[27].mxu1  ;;  %1576 = vmatpush3.bf16.msra.mxu0 %v745_v59  ;;  %v737_v4 = vmax.f32 %v705_v61, 0.0  ;;  %v1144_v61 = vld [vmem:[%s2085_s5 + $0x38] sm:$0xff]  ;;  %v1146_v0 = vld [vmem:[%s2085_s5 + $0x48] sm:$0xff] }
 0x3ba   :  { %v700_v3 = vadd.f32 %v1277_v31, %v699_v2  ;;  %1577 = vmatprep.subr.bf16.mxu0 %v746_v58  ;;  %v735_v6 = vmax.f32 %v697_v63, 0.0  ;;  %v1739_v62 = vpack.c.bf16 %v1144_v61, %v1143_v60  ;;  %v1145_v63 = vld [vmem:[%s2085_s5 + $0x40] sm:$0xff]  ;;  %v1147_v2 = vld [vmem:[%s2085_s5 + $0x50] sm:$0xff] }
 0x3bb   :  { %v738_v5 = vmax.f32 %v708_v1, 0.0  ;;  %v1742_v1 = vpack.c.bf16 %v1146_v0, %v1145_v63 }
 0x3bc   :  { %v736_v7 = vmax.f32 %v700_v3, 0.0  ;;  %v1148_v3 = vld [vmem:[%s2085_s5 + $0x58] sm:$0xff] }
 0x3bd   :  { %v748_v8 = vpack.c.bf16 %v738_v5, %v737_v4  ;;  %1578 = vmatpush3.bf16.msra.mxu0 %v746_v58  ;;  %v1142_v58 = vld [vmem:[%s2085_s5 + $0x28] sm:$0xff]  ;;  %v1745_v4 = vpack.c.bf16 %v1148_v3, %v1147_v2  ;;  %v1149_v5 = vld [vmem:[%s2085_s5 + $0x60] sm:$0xff] }
 0x3be   :  { %v747_v9 = vpack.c.bf16 %v736_v7, %v735_v6  ;;  %v1569_v10 = vpop.f32.mrb[28].mxu1  ;;  %v1736_v59 = vpack.c.bf16 %v1142_v58, %v1141_v57  ;;  %v1150_v6 = vld [vmem:[%s2085_s5 + $0x68] sm:$0xff] }
 0x3bf   :  { %v721_v11 = vadd.f32 %v1569_v10, %v1277_v31  ;;  %v712_v12 = vpop.f32.mrb[29].mxu1  ;;  %v1748_v7 = vpack.c.bf16 %v1150_v6, %v1149_v5  ;;  %v1050_v5 = vld [vmem:[%s2086_s1] sm:$0xff] }
 0x3c0   :  { %v713_v13 = vadd.f32 %v1277_v31, %v712_v12  ;;  %v1570_v16 = vpop.f32.mrb[30].mxu1  ;;  %1579 = vmatprep.subr.bf16.mxu0 %v747_v9 }
 0x3c1   :  { %v724_v17 = vadd.f32 %v1570_v16, %v1277_v31  ;;  %v715_v23 = vpop.f32.mrb[31].mxu1  ;;  %1580 = vmatpush3.bf16.msra.mxu0 %v747_v9  ;;  %v741_v25 = vmax.f32 %v721_v11, 0.0  ;;  %v1152_v9 = vld [vmem:[%s2085_s5 + $0x78] sm:$0xff]  ;;  %v1303_v11 = vld [vmem:[%s2084_s4 + $0x2] ss:$0 sm:$0xff] }
 0x3c2   :  { %v716_v24 = vadd.f32 %v1277_v31, %v715_v23  ;;  %1581 = vmatprep.subr.bf16.mxu0 %v748_v8  ;;  %v739_v27 = vmax.f32 %v713_v13, 0.0  ;;  %v1795_v31 = vld [vmem:[%s2083_s3 + $0xb8] sm:$0xff]  }
 0x3c3   :  { %v742_v26 = vmax.f32 %v724_v17, 0.0  ;;  %1617 = vmatprep.subr.bf16.mxu1 %v1795_v31 }
 0x3c4   :  { %v740_v28 = vmax.f32 %v716_v24, 0.0  ;;  %1618 = vmatpush3.bf16.msra.mxu1 %v1795_v31 }
 0x3c5   :  { %v750_v29 = vpack.c.bf16 %v742_v26, %v741_v25  ;;  %1582 = vmatpush3.bf16.msra.mxu0 %v748_v8  ;;  %1729 = vmatprep.subr.bf16.mxu1 %v1796_v49  ;;  %v1151_v8 = vld [vmem:[%s2085_s5 + $0x70] sm:$0xff] }
 0x3c6   :  { %v749_v30 = vpack.c.bf16 %v740_v28, %v739_v27  ;;  %v1751_v10 = vpack.c.bf16 %v1152_v9, %v1151_v8  ;;  %v1312_v8 = vld [vmem:[%s2087_s6] ss:$0 sm:$0xff] }
 0x3c8   :  { %1583 = vmatprep.subr.bf16.mxu0 %v749_v30 }
 0x3c9   :  { %1584 = vmatpush3.bf16.msra.mxu0 %v749_v30 }
 0x3ca   :  { %1585 = vmatprep.subr.bf16.mxu0 %v750_v29 }
 0x3cd   :  { %1586 = vmatpush3.bf16.msra.mxu0 %v750_v29 }
 0x3ce   :  { %1705 = vmatprep.subr.bf16.mxu0 %v1796_v49 }
 0x3d0   :  { %1588 = vmatmul.mubr.bf16.vlgmr.msra.gmra.mrb[32].mxu0 %v1887_v14 }
 0x3d1   :  { %1591 = vmatprep.mubr.bf16.mxu0 %v1892_v15 }
 0x3d8   :  { %1592 = vmatmul.mubr.bf16.gmra.mrb[36].mxu0 %v1905_v18 }
 0x3d9   :  { %1595 = vmatprep.mubr.bf16.mxu0 %v1910_v19 }
 0x3e0   :  { %1596 = vmatmul.mubr.bf16.gmra.mrb[40].mxu0 %v1917_v20 }
 0x3e1   :  { %1599 = vmatprep.mubr.bf16.mxu0 %v1922_v21 }
 0x3e8   :  { %1600 = vmatmul.mubr.bf16.gmra.mrb[44].mxu0 %v1929_v22 }
 0x3e9   :  { %1667 = vmatprep.mubr.msk.f32.mxu0 %vm1797_vm0, %v1798_v50 }
 0x4a3   :  { %v1589_v32 = vpop.f32.mrb[32].mxu0 }
 0x4a4   :  { %v785_v14 = vpop.f32.mrb[33].mxu0 }
 0x4a5   :  { %v1590_v33 = vpop.f32.mrb[34].mxu0 }
 0x4a6   :  { %v849_v15 = vpack.c.bf16 %v1590_v33, %v1589_v32  ;;  %v788_v34 = vpop.f32.mrb[35].mxu0 }
 0x4a7   :  { %v848_v18 = vpack.c.bf16 %v788_v34, %v785_v14 }
 0x4a9   :  { %1619 = vmatprep.mubr.bf16.mxu1 %v848_v18 }
 0x4aa   :  { %1620 = vmatmul.mubr.bf16.vlgmr.msra.gmra.mrb[32].mxu1 %v849_v15 }
 0x4ab   :  { %v1593_v19 = vpop.f32.mrb[36].mxu0  ;;  %1731 = vmatpush3.bf16.msra.mxu1 %v1730_v54 }
 0x4ac   :  { %v801_v20 = vpop.f32.mrb[37].mxu0  ;;  %1732 = vmatprep.subr.bf16.mxu1 %v1796_v49 }
 0x4ad   :  { %v1594_v35 = vpop.f32.mrb[38].mxu0 }
 0x4ae   :  { %v851_v21 = vpack.c.bf16 %v1594_v35, %v1593_v19  ;;  %v804_v36 = vpop.f32.mrb[39].mxu0 }
 0x4af   :  { %v850_v22 = vpack.c.bf16 %v804_v36, %v801_v20  ;;  %1734 = vmatpush3.bf16.msra.mxu1 %v1733_v55 }
 0x4b0   :  { %1735 = vmatprep.subr.bf16.mxu1 %v1796_v49 }
 0x4b1   :  { %1623 = vmatprep.mubr.bf16.mxu1 %v850_v22 }
 0x4b2   :  { %1624 = vmatmul.mubr.bf16.gmra.mrb[36].mxu1 %v851_v21 }
 0x4b3   :  { %v1597_v37 = vpop.f32.mrb[40].mxu0  ;;  %1737 = vmatpush3.bf16.msra.mxu1 %v1736_v59 }
 0x4b4   :  { %v817_v38 = vpop.f32.mrb[41].mxu0  ;;  %1738 = vmatprep.subr.bf16.mxu1 %v1796_v49 }
 0x4b5   :  { %v1598_v39 = vpop.f32.mrb[42].mxu0 }
 0x4b6   :  { %v853_v40 = vpack.c.bf16 %v1598_v39, %v1597_v37  ;;  %v820_v41 = vpop.f32.mrb[43].mxu0 }
 0x4b7   :  { %v852_v42 = vpack.c.bf16 %v820_v41, %v817_v38  ;;  %1740 = vmatpush3.bf16.msra.mxu1 %v1739_v62 }
 0x4b8   :  { %1741 = vmatprep.subr.bf16.mxu1 %v1796_v49 }
 0x4b9   :  { %1627 = vmatprep.mubr.bf16.mxu1 %v852_v42 }
 0x4ba   :  { %1628 = vmatmul.mubr.bf16.gmra.mrb[40].mxu1 %v853_v40 }
 0x4bb   :  { %v1601_v43 = vpop.f32.mrb[44].mxu0  ;;  %1743 = vmatpush3.bf16.msra.mxu1 %v1742_v1 }
 0x4bc   :  { %v833_v44 = vpop.f32.mrb[45].mxu0  ;;  %1744 = vmatprep.subr.bf16.mxu1 %v1796_v49 }
 0x4bd   :  { %v1602_v45 = vpop.f32.mrb[46].mxu0 }
 0x4be   :  { %v855_v46 = vpack.c.bf16 %v1602_v45, %v1601_v43  ;;  %v836_v47 = vpop.f32.mrb[47].mxu0 }
 0x4bf   :  { %v854_v48 = vpack.c.bf16 %v836_v47, %v833_v44  ;;  %1746 = vmatpush3.bf16.msra.mxu1 %v1745_v4 }
 0x4c0   :  { %1747 = vmatprep.subr.bf16.mxu1 %v1796_v49 }
 0x4c1   :  { %1631 = vmatprep.mubr.bf16.mxu1 %v854_v48 }
 0x4c2   :  { %1632 = vmatmul.mubr.bf16.gmra.mrb[44].mxu1 %v855_v46 }
 0x4c3   :  { %1702 = vmatprep.mubr.msk.f32.mxu1 %vm1797_vm0, %v1798_v50  ;;  %1749 = vmatpush3.bf16.msra.mxu1 %v1748_v7 }
 0x4c4   :  { %1750 = vmatprep.subr.bf16.mxu1 %v1796_v49 }
 0x4c7   :  { %1752 = vmatpush3.bf16.msra.mxu1 %v1751_v10 }
 0x57d   :  { %v1621_v12 = vpop.f32.mrb[32].mxu1 }
 0x57e   :  { %v972_v13 = vadd.f32 %v1621_v12, %v1303_v11  ;;  %v963_v16 = vpop.f32.mrb[33].mxu1 }
 0x57f   :  { %v964_v17 = vadd.f32 %v1303_v11, %v963_v16  ;;  %v1622_v23 = vpop.f32.mrb[34].mxu1 }
 0x580   :  { %v975_v24 = vadd.f32 %v1622_v23, %v1303_v11  ;;  %v966_v25 = vpop.f32.mrb[35].mxu1  ;;  %v1028_v27 = vmax.f32 %v972_v13, 0.0 }
 0x581   :  { %v967_v26 = vadd.f32 %v1303_v11, %v966_v25  ;;  %v1026_v29 = vmax.f32 %v964_v17, 0.0 }
 0x582   :  { %v1029_v28 = vmax.f32 %v975_v24, 0.0 }
 0x583   :  { %v1027_v30 = vmax.f32 %v967_v26, 0.0 }
 0x584   :  { %v1043_v31 = vpack.c.bf16 %v1029_v28, %v1028_v27 }
 0x585   :  { %v1042_v32 = vpack.c.bf16 %v1027_v30, %v1026_v29  ;;  %v1625_v14 = vpop.f32.mrb[36].mxu1 }
 0x586   :  { %v988_v33 = vadd.f32 %v1625_v14, %v1303_v11  ;;  %v979_v15 = vpop.f32.mrb[37].mxu1 }
 0x587   :  { %v980_v34 = vadd.f32 %v1303_v11, %v979_v15  ;;  %v1626_v18 = vpop.f32.mrb[38].mxu1  ;;  %1707 = vmatpush3.bf16.msra.mxu0 %v1042_v32 }
 0x588   :  { %v991_v19 = vadd.f32 %v1626_v18, %v1303_v11  ;;  %v982_v20 = vpop.f32.mrb[39].mxu1  ;;  %1708 = vmatprep.subr.bf16.mxu0 %v1796_v49  ;;  %v1032_v21 = vmax.f32 %v988_v33, 0.0 }
 0x589   :  { %v983_v35 = vadd.f32 %v1303_v11, %v982_v20  ;;  %v1030_v22 = vmax.f32 %v980_v34, 0.0 }
 0x58a   :  { %v1033_v36 = vmax.f32 %v991_v19, 0.0 }
 0x58b   :  { %v1031_v37 = vmax.f32 %v983_v35, 0.0  ;;  %1710 = vmatpush3.bf16.msra.mxu0 %v1043_v31 }
 0x58c   :  { %v1045_v38 = vpack.c.bf16 %v1033_v36, %v1032_v21  ;;  %1711 = vmatprep.subr.bf16.mxu0 %v1796_v49 }
 0x58d   :  { %v1044_v39 = vpack.c.bf16 %v1031_v37, %v1030_v22  ;;  %v1629_v40 = vpop.f32.mrb[40].mxu1 }
 0x58e   :  { %v1004_v41 = vadd.f32 %v1629_v40, %v1303_v11  ;;  %v995_v42 = vpop.f32.mrb[41].mxu1 }
 0x58f   :  { %v996_v43 = vadd.f32 %v1303_v11, %v995_v42  ;;  %v1630_v44 = vpop.f32.mrb[42].mxu1  ;;  %1713 = vmatpush3.bf16.msra.mxu0 %v1044_v39 }
 0x590   :  { %v1007_v45 = vadd.f32 %v1630_v44, %v1303_v11  ;;  %v998_v46 = vpop.f32.mrb[43].mxu1  ;;  %1714 = vmatprep.subr.bf16.mxu0 %v1796_v49  ;;  %v1036_v48 = vmax.f32 %v1004_v41, 0.0 }
 0x591   :  { %v999_v47 = vadd.f32 %v1303_v11, %v998_v46  ;;  %v1034_v51 = vmax.f32 %v996_v43, 0.0 }
 0x592   :  { %v1037_v50 = vmax.f32 %v1007_v45, 0.0 }
 0x593   :  { %v1035_v52 = vmax.f32 %v999_v47, 0.0  ;;  %1716 = vmatpush3.bf16.msra.mxu0 %v1045_v38 }
 0x594   :  { %v1047_v53 = vpack.c.bf16 %v1037_v50, %v1036_v48  ;;  %1717 = vmatprep.subr.bf16.mxu0 %v1796_v49 }
 0x595   :  { %v1046_v54 = vpack.c.bf16 %v1035_v52, %v1034_v51  ;;  %v1633_v56 = vpop.f32.mrb[44].mxu1 }
 0x596   :  { %v1020_v55 = vadd.f32 %v1633_v56, %v1303_v11  ;;  %v1011_v57 = vpop.f32.mrb[45].mxu1 }
 0x597   :  { %v1012_v58 = vadd.f32 %v1303_v11, %v1011_v57  ;;  %v1634_v59 = vpop.f32.mrb[46].mxu1  ;;  %1719 = vmatpush3.bf16.msra.mxu0 %v1046_v54 }
 0x598   :  { %v1023_v60 = vadd.f32 %v1634_v59, %v1303_v11  ;;  %v1014_v61 = vpop.f32.mrb[47].mxu1  ;;  %1720 = vmatprep.subr.bf16.mxu0 %v1796_v49  ;;  %v1040_v63 = vmax.f32 %v1020_v55, 0.0 }
 0x599   :  { %v1015_v62 = vadd.f32 %v1303_v11, %v1014_v61  ;;  %v1038_v1 = vmax.f32 %v1012_v58, 0.0 }
 0x59a   :  { %v1041_v0 = vmax.f32 %v1023_v60, 0.0 }
 0x59b   :  { %v1039_v2 = vmax.f32 %v1015_v62, 0.0  ;;  %1722 = vmatpush3.bf16.msra.mxu0 %v1047_v53 }
 0x59c   :  { %v1049_v3 = vpack.c.bf16 %v1041_v0, %v1040_v63  ;;  %1723 = vmatprep.subr.bf16.mxu0 %v1796_v49 }
 0x59d   :  { %v1048_v4 = vpack.c.bf16 %v1039_v2, %v1038_v1 }
 0x59f   :  { %1725 = vmatpush3.bf16.msra.mxu0 %v1048_v4 }
 0x5a0   :  { %1726 = vmatprep.subr.bf16.mxu0 %v1796_v49 }
 0x5a3   :  { %1728 = vmatpush3.bf16.msra.mxu0 %v1049_v3 }
 0x5a6   :  { %1668 = vmatmul.mubr.f32.vlgmr.msra.gmra.mrb[48].mxu0 %v1050_v5 }
 0x679   :  { %v1133_v6 = vpop.f32.mrb[48].mxu0 }
 0x67a   :  { %v1669_v7 = vpop.f32.mrb[49].mxu0  ;;  %1703 = vmatmul.mubr.f32.vlgmr.msra.gmra.mrb[48].mxu1 %v1133_v6 }
 0x74d   :  { %v1226_v9 = vpop.f32.mrb[48].mxu1 }
 0x74e   :  { %v1227_v10 = vadd.f32 %v1312_v8, %v1226_v9  ;;  %v1704_v11 = vpop.f32.mrb[49].mxu1 }
 0x750   :  { %1230 = vst [vmem:[%s2088_s7] sm:$0xff] %v1227_v10 }

</bundles_post_ra>
